<compile_context>
chip_gen: v7x
topology: tpu7x:2x2x1
jax: 0.10.0
libtpu: 0.0.40
codegen_flags: <defaults>
</compile_context>

<pallas_src>
import functools

import numpy as np
import ml_dtypes
import jax
import jax.numpy as jnp
from jax import lax
from jax.experimental import pallas as pl
from jax.experimental.pallas import tpu as pltpu


def _level_kernel(par_ref, xpx_ref, tab_ref, wh_ref, wout_ref, bout_ref,
                  dist_ref, state_ref, gather_ref, *, H, C):
    """One BFS wavefront level per grid step (grid is sequential over depth)."""
    f32, bf16 = jnp.float32, jnp.bfloat16
    Wpad = xpx_ref.shape[0]
    SW = state_ref.shape[1]              # 2H + C + 1 : [h | c | committed one-hot]
    CP = dist_ref.shape[1]               # lane-dense padded class dim
    n_cls = tab_ref.shape[0]             # C + 1 ('start' + classes)

    lvl = pl.program_id(0)
    base = lvl * Wpad                     # first padded schedule slot of this level

    # Virtual parent row (slot 0): h = c = 0, committed class = 'start' token.
    @pl.when(lvl == 0)
    def _init():
        col = lax.broadcasted_iota(jnp.int32, (1, SW), 1)
        state_ref[pl.ds(0, 1), :] = jnp.where(col == 2 * H, 1.0, 0.0).astype(f32)

    # Parent gather: ONE (1, 2H+C+1) row copy per node (h, c, one-hot fused).
    def _gather(w, carry):
        p = par_ref[base + w]
        gather_ref[pl.ds(w, 1), :] = state_ref[pl.ds(p, 1), :]
        return carry
    lax.fori_loop(0, Wpad, _gather, 0)

    g = gather_ref[...]
    hp = g[:, 0:H]
    cp = g[:, H:2 * H]
    onehot_p = g[:, 2 * H:]

    # Child feedback rebuilt from the parent's committed class: a single
    # one-hot @ fused [EX | EPX] table matmul (no per-step feedback scratch).
    fb = jnp.dot(onehot_p.astype(bf16), tab_ref[...], preferred_element_type=f32)
    pre = xpx_ref[...] + fb                                    # (Wpad, 6H) f32

    # Only the (W,H)@(H,5H) h-recurrence remains on the serial path.
    iofur = pre[:, 0:5 * H] + jnp.dot(hp.astype(bf16), wh_ref[...],
                                      preferred_element_type=f32)
    px = pre[:, 5 * H:6 * H]

    i_g = jax.nn.sigmoid(iofur[:, 0:H])
    o_g = jax.nn.sigmoid(iofur[:, H:2 * H])
    f_g = jax.nn.sigmoid(iofur[:, 2 * H:3 * H])
    u_g = jnp.tanh(iofur[:, 3 * H:4 * H])
    r_g = jax.nn.sigmoid(iofur[:, 4 * H:5 * H])

    c = i_g * u_g + f_g * cp
    h = o_g * jnp.tanh(c)
    hf = px + r_g * (h - px)             # highway blend (one fewer VPU op)
    # TODO(synk): eval-mode forward; torch builds a dropout mask but applies it
    # only in training mode.

    dist = jnp.dot(hf.astype(bf16), wout_ref[...],
                   preferred_element_type=f32) + bout_ref[...]  # (Wpad, CP)
    dist_ref[...] = dist                  # lane-dense, contiguous per level

    # Greedy commitment = argmax over classes 1..C-1 (first max wins).
    lane = lax.broadcasted_iota(jnp.int32, (Wpad, CP), 1)
    valid = (lane >= 1) & (lane < C)
    masked = jnp.where(valid, dist, jnp.float32(-1e30))
    mval = jnp.max(masked, axis=-1, keepdims=True)
    commit = jnp.min(jnp.where(masked == mval, lane, jnp.int32(CP)),
                     axis=-1, keepdims=True)                    # (Wpad, 1) int32

    cls_lane = lax.broadcasted_iota(jnp.int32, (Wpad, n_cls), 1)
    onehot_next = jnp.where(cls_lane == commit + 1, 1.0, 0.0).astype(f32)

    # Single batched write-back of the level's child-visible state.
    state_ref[pl.ds(base + 1, Wpad), :] = jnp.concatenate(
        [hf, c, onehot_next], axis=1)


def _vmem_limit_bytes():
    # v5e / v6e have 128 MiB physical VMEM, v7x only 64 MiB; keep the whole
    # recurrence state resident but leave headroom for double-buffering.
    try:
        cap = int(pltpu.get_tpu_info().vmem_capacity_bytes)
    except Exception:
        cap = 64 * 1024 * 1024
    return int(min(96 * 1024 * 1024, (cap * 3) // 4))


def build_wavefront_schedule(children, roots, num_nodes, pad_to=16):
    """Flatten a forest of trees into padded BFS wavefront levels.

    Independent trees share levels (batched wavefronts fill the MXU sublanes);
    every level is padded to a common width wpad (multiple of 16).

    Returns:
      sched_nodes[t]       : object index at padded schedule position t (pads -> 0)
      sched_parent_slot[t] : 1 + position of t's parent, or 0 for roots / pads
      node_pos[n]          : padded schedule position of node n
      wpad                 : static padded level width
    """
    parent_of = {c: n for n, chs in children.items() for c in chs}
    levels = [list(roots)]
    while True:
        nxt = [c for n in levels[-1] for c in children.get(n, [])]
        if not nxt:
            break
        levels.append(nxt)
    wmax = max(len(lvl) for lvl in levels)
    wpad = ((wmax + pad_to - 1) // pad_to) * pad_to
    L = len(levels)
    sched_nodes = np.zeros((L * wpad,), np.int32)
    parent_slot = np.zeros((L * wpad,), np.int32)
    node_pos = np.zeros((num_nodes,), np.int32)
    slot_of = {}
    roots_set = set(roots)
    for l, lvl in enumerate(levels):
        for w, n in enumerate(lvl):
            pos = l * wpad + w
            sched_nodes[pos] = n
            node_pos[n] = pos
            slot_of[n] = pos + 1
            parent_slot[pos] = 0 if n in roots_set else slot_of[parent_of[n]]
    return (jnp.asarray(sched_nodes), jnp.asarray(parent_slot),
            jnp.asarray(node_pos), wpad)


def decoder_tree_lstm(features, sched_nodes, sched_parent_slot, node_pos, wpad,
                      params):
    """features: (N, Din). sched_* / node_pos / wpad: host-built padded schedule."""
    H = params['wh'].shape[0]
    C = params['wout'].shape[1]
    S = int(sched_nodes.shape[0])         # L * wpad
    L = S // wpad
    f32, bf16 = jnp.float32, jnp.bfloat16
    CP = max(128, ((C + 127) // 128) * 128)   # lane-dense padded class dim

    def mm16(a, b):
        return jnp.dot(a.astype(bf16), b.astype(bf16), preferred_element_type=f32)

    # Hoisted batched feature matmuls (off the serial path); biases folded in.
    x_all = mm16(features, params['wx_f']) + (params['bx'] + params['bh'])   # (N,5H)
    px_all = mm16(features, params['wpx_f']) + params['bpx']                 # (N,H)
    xpx = jnp.concatenate([x_all, px_all], axis=1)[sched_nodes]              # (S,6H)
    # TODO(synk): stream xpx as bf16 (halves the HBM->VMEM DMA) once the
    # quantized-bias tolerance is re-validated at production sizes.

    # Fused per-class feedback table [EX | EPX]; one-time matmuls kept at full
    # f32 precision so the bf16 table is deterministic.
    ex_tab = jnp.dot(params['embed'], params['wx_e'], preferred_element_type=f32,
                     precision=lax.Precision.HIGHEST)
    epx_tab = jnp.dot(params['embed'], params['wpx_e'], preferred_element_type=f32,
                      precision=lax.Precision.HIGHEST)
    fused_tab = jnp.concatenate([ex_tab, epx_tab], axis=1).astype(bf16)      # (C+1,6H)

    wout_pad = jnp.zeros((H, CP), f32).at[:, :C].set(params['wout']).astype(bf16)
    bout_pad = jnp.zeros((1, CP), f32).at[:, :C].set(params['bout'])

    kernel = functools.partial(_level_kernel, H=H, C=C)

    grid_spec = pltpu.PrefetchScalarGridSpec(
        num_scalar_prefetch=1,                     # parent-slot table -> SMEM
        grid=(L,),                                 # sequential over tree depth
        in_specs=[
            pl.BlockSpec((wpad, 6 * H), lambda l, par: (l, 0)),    # xpx, step order
            pl.BlockSpec((C + 1, 6 * H), lambda l, par: (0, 0)),   # fused [EX|EPX]
            pl.BlockSpec((H, 5 * H), lambda l, par: (0, 0)),       # Wh
            pl.BlockSpec((H, CP), lambda l, par: (0, 0)),          # Wout (lane-dense)
            pl.BlockSpec((1, CP), lambda l, par: (0, 0)),          # bout
        ],
        out_specs=pl.BlockSpec((wpad, CP), lambda l, par: (l, 0)),
        scratch_shapes=[
            pltpu.VMEM((S + 1, 2 * H + C + 1), f32),   # per-slot [h|c|one-hot] state
            pltpu.VMEM((wpad, 2 * H + C + 1), f32),    # per-level parent gather
        ],
    )

    # TODO(synk): for a large batched forest, shard level rows over v7x's two
    # TensorCores (core_map / leading "parallel" axis); single invocation here.
    dists_sched = pl.pallas_call(
        kernel,
        out_shape=jax.ShapeDtypeStruct((S, CP), f32),
        grid_spec=grid_spec,
        compiler_params=pltpu.CompilerParams(
            dimension_semantics=("arbitrary",),
            vmem_limit_bytes=_vmem_limit_bytes()),
    )(sched_parent_slot, xpx, fused_tab, params['wh'].astype(bf16),
      wout_pad, bout_pad)

    # Padded step order -> node-index order (== torch's dists[order]), strip lane
    # padding; commitments derived from the exact dist rows the kernel used.
    out_dists = dists_sched[node_pos, :C]
    out_commits = (jnp.argmax(out_dists[:, 1:], axis=1) + 1).astype(jnp.int32)
    return out_dists, out_commits


# ----------------------------- numpy reference ------------------------------

def _round_bf16(x):
    """Round a float32 array to bfloat16 precision (round-to-nearest-even)."""
    return np.asarray(x, np.float32).astype(ml_dtypes.bfloat16).astype(np.float32)


def reference(features, children, root, p):
    """Eval-mode numpy reference of DecoderTreeLSTM (backward direction),
    mirroring the kernel's bf16-operand / f32-accumulate matmul numerics."""
    r16 = _round_bf16

    def mm(a, b):
        return r16(a) @ r16(b)

    sig = lambda x: 1.0 / (1.0 + np.exp(-x))

    N = features.shape[0]
    H = p['wh'].shape[0]
    C = p['wout'].shape[1]
    X = mm(features, p['wx_f']) + (p['bx'][0] + p['bh'][0])
    PX = mm(features, p['wpx_f']) + p['bpx'][0]
    EXq = r16(np.asarray(p['embed'], np.float32) @ np.asarray(p['wx_e'], np.float32))
    EPXq = r16(np.asarray(p['embed'], np.float32) @ np.asarray(p['wpx_e'], np.float32))
    whq = r16(p['wh'])
    woutq = r16(p['wout'])

    dists = np.zeros((N, C), np.float32)
    commits = np.zeros((N,), np.int32)

    def rec(n, ph, pc, pex, pepx):
        iofur = X[n] + pex + r16(ph) @ whq
        px = PX[n] + pepx
        i_g, o_g, f_g = sig(iofur[0:H]), sig(iofur[H:2 * H]), sig(iofur[2 * H:3 * H])
        u_g, r_g = np.tanh(iofur[3 * H:4 * H]), sig(iofur[4 * H:5 * H])
        c = i_g * u_g + f_g * pc
        h = o_g * np.tanh(c)
        hf = px + r_g * (h - px)
        dist = r16(hf) @ woutq + p['bout'][0]
        commit = int(np.argmax(dist[1:])) + 1
        dists[n] = dist
        commits[n] = commit
        for ch in children[n]:
            rec(ch, hf, c, EXq[commit + 1], EPXq[commit + 1])

    rec(root, np.zeros((H,), np.float32), np.zeros((H,), np.float32),
        EXq[0], EPXq[0])
    return dists, commits


if __name__ == "__main__":
    key = jax.random.PRNGKey(0)
    num_obj = 7
    inputs_dim = 16
    embed_dim = 8
    hidden_dim = 32
    num_classes = 6  # classes incl. background at index 0; embed table has C+1 rows

    keys = jax.random.split(key, 12)
    s = 0.3
    f32 = jnp.float32
    params = {
        'wx_f': jax.random.normal(keys[0], (inputs_dim, 5 * hidden_dim), f32) * s,
        'wx_e': jax.random.normal(keys[1], (embed_dim, 5 * hidden_dim), f32) * s,
        'bx':   jax.random.normal(keys[2], (1, 5 * hidden_dim), f32) * 0.05,
        'wh':   jax.random.normal(keys[3], (hidden_dim, 5 * hidden_dim), f32) * s,
        'bh':   jax.random.normal(keys[4], (1, 5 * hidden_dim), f32) * 0.05,
        'wpx_f': jax.random.normal(keys[5], (inputs_dim, hidden_dim), f32) * s,
        'wpx_e': jax.random.normal(keys[6], (embed_dim, hidden_dim), f32) * s,
        'bpx':  jax.random.normal(keys[7], (1, hidden_dim), f32) * 0.05,
        'wout': jax.random.normal(keys[8], (hidden_dim, num_classes), f32) * s,
        'bout': jax.random.normal(keys[9], (1, num_classes), f32) * 0.05,
        # TODO(synk): GloVe obj_edge_vectors replaced by deterministic random init.
        'embed': jax.random.normal(keys[10], (num_classes + 1, embed_dim), f32) * s,
    }
    features = jax.random.normal(keys[11], (num_obj, inputs_dim), f32)

    # Deterministic synthetic tree (ArbitraryTree equivalent); node labels are
    # deliberately not in BFS order so the schedule / reorder path is exercised.
    children = {3: [5, 1], 5: [0, 6, 2], 1: [4], 0: [], 6: [], 2: [], 4: []}
    root = 3

    sched_nodes, sched_parent_slot, node_pos, wpad = build_wavefront_schedule(
        children, roots=[root], num_nodes=num_obj, pad_to=16)

    out_dists, out_commitments = decoder_tree_lstm(
        features, sched_nodes, sched_parent_slot, node_pos, wpad, params)
    jax.block_until_ready((out_dists, out_commitments))

    ref_d, ref_c = reference(np.asarray(features), children, root,
                             {k: np.asarray(v) for k, v in params.items()})
    assert np.array_equal(np.asarray(out_commitments), ref_c), \
        (np.asarray(out_commitments), ref_c)
    assert np.allclose(np.asarray(out_dists), ref_d, atol=1e-2, rtol=1e-2)
    print("KERNEL_OK")
</pallas_src>

<mosaic_0001>
module attributes {stable_mosaic.version = 11 : i64} {
  func.func @_level_kernel(%arg0: i32, %arg1: memref<48xi32, #tpu.memory_space<smem>>, %arg2: memref<16x192xf32, #tpu.memory_space<vmem>>, %arg3: memref<7x192xbf16, #tpu.memory_space<vmem>>, %arg4: memref<32x160xbf16, #tpu.memory_space<vmem>>, %arg5: memref<32x128xbf16, #tpu.memory_space<vmem>>, %arg6: memref<1x128xf32, #tpu.memory_space<vmem>>, %arg7: memref<16x128xf32, #tpu.memory_space<vmem>>, %arg8: memref<49x71xf32, #tpu.memory_space<vmem>>, %arg9: memref<16x71xf32, #tpu.memory_space<vmem>>) attributes {dimension_semantics = [#tpu.dimension_semantics<arbitrary>], iteration_bounds = array<i64: 3>, scalar_prefetch = 1 : i64, scratch_operands = 2 : i64, tpu.core_type = #tpu.core_type<tc>, window_params = [{transform_indices = @transform_0, window_bounds = array<i64: 16, 192>}, {pipeline_mode = #tpu.pipeline_mode<synchronous>, transform_indices = @transform_1, window_bounds = array<i64: 7, 192>}, {pipeline_mode = #tpu.pipeline_mode<synchronous>, transform_indices = @transform_2, window_bounds = array<i64: 32, 160>}, {pipeline_mode = #tpu.pipeline_mode<synchronous>, transform_indices = @transform_3, window_bounds = array<i64: 32, 128>}, {pipeline_mode = #tpu.pipeline_mode<synchronous>, transform_indices = @transform_4, window_bounds = array<i64: 1, 128>}, {transform_indices = @transform_5, window_bounds = array<i64: 16, 128>}]} {
    %c16_i32 = arith.constant 16 : i32
    %0 = arith.muli %arg0, %c16_i32 : i32
    %c0_i32 = arith.constant 0 : i32
    %1 = arith.cmpi eq, %arg0, %c0_i32 : i32
    %2 = arith.extui %1 : i1 to i32
    %c0_i32_0 = arith.constant 0 : i32
    %3 = arith.cmpi ne, %2, %c0_i32_0 : i32
    scf.if %3 {
      %89 = tpu.iota {dimensions = array<i32: 1>} : vector<1x71xi32>
      %c64_i32 = arith.constant 64 : i32
      %90 = vector.broadcast %c64_i32 : i32 to vector<1x71xi32>
      %91 = arith.cmpi eq, %89, %90 : vector<1x71xi32>
      %cst_32 = arith.constant 1.000000e+00 : f32
      %cst_33 = arith.constant 0.000000e+00 : f32
      %92 = vector.broadcast %cst_32 : f32 to vector<1x71xf32>
      %93 = vector.broadcast %cst_33 : f32 to vector<1x71xf32>
      %94 = arith.select %91, %92, %93 : vector<1x71xi1>, vector<1x71xf32>
      %c0_34 = arith.constant 0 : index
      %c0_35 = arith.constant 0 : index
      %95 = vector.load %arg8[%c0_34, %c0_35] : memref<49x71xf32, #tpu.memory_space<vmem>>, vector<1x71xf32>
      tpu.vector_store %arg8[%c0_34, %c0_35], %94 {strides = array<i32>} : memref<49x71xf32, #tpu.memory_space<vmem>>, vector<1x71xf32>,
    } else {
    }
    %c0_i32_1 = arith.constant 0 : i32
    %c16_i32_2 = arith.constant 16 : i32
    %4 = arith.addi %c0_i32_1, %c16_i32_2 : i32
    %c1_i32 = arith.constant 1 : i32
    scf.for %arg10 = %c0_i32_1 to %4 step %c1_i32  : i32 {
      %89 = arith.addi %0, %arg10 : i32
      %90 = arith.index_cast %89 : i32 to index
      %91 = memref.load %arg1[%90] : memref<48xi32, #tpu.memory_space<smem>>
      %92 = arith.index_cast %91 : i32 to index
      %c0_32 = arith.constant 0 : index
      %93 = vector.load %arg8[%92, %c0_32] : memref<49x71xf32, #tpu.memory_space<vmem>>, vector<1x71xf32>
      %94 = arith.index_cast %arg10 : i32 to index
      %c0_33 = arith.constant 0 : index
      %95 = vector.load %arg9[%94, %c0_33] : memref<16x71xf32, #tpu.memory_space<vmem>>, vector<1x71xf32>
      tpu.vector_store %arg9[%94, %c0_33], %93 {strides = array<i32>} : memref<16x71xf32, #tpu.memory_space<vmem>>, vector<1x71xf32>,
    }
    %c16_i32_3 = arith.constant 16 : i32
    %c0 = arith.constant 0 : index
    %c0_4 = arith.constant 0 : index
    %5 = vector.load %arg9[%c0, %c0_4] : memref<16x71xf32, #tpu.memory_space<vmem>>, vector<16x71xf32>
    %6 = vector.extract_strided_slice %5 {offsets = [0, 0], sizes = [16, 32], strides = [1, 1]} : vector<16x71xf32> to vector<16x32xf32>
    %7 = vector.extract_strided_slice %5 {offsets = [0, 32], sizes = [16, 32], strides = [1, 1]} : vector<16x71xf32> to vector<16x32xf32>
    %8 = vector.extract_strided_slice %5 {offsets = [0, 64], sizes = [16, 7], strides = [1, 1]} : vector<16x71xf32> to vector<16x7xf32>
    %9 = arith.truncf %8 : vector<16x7xf32> to vector<16x7xbf16>
    %c0_5 = arith.constant 0 : index
    %c0_6 = arith.constant 0 : index
    %10 = vector.load %arg3[%c0_5, %c0_6] : memref<7x192xbf16, #tpu.memory_space<vmem>>, vector<7x192xbf16>
    %cst = arith.constant dense<0.000000e+00> : vector<16x192xf32>
    %11 = tpu.matmul %9, %10, %cst {dimension_numbers = #tpu.dot_dimension_numbers<[1], [0], [0], [1], [0, 0, 1, 1], [], []>} : vector<16x7xbf16>, vector<7x192xbf16>, vector<16x192xf32> -> vector<16x192xf32>
    %c0_7 = arith.constant 0 : index
    %c0_8 = arith.constant 0 : index
    %12 = vector.load %arg2[%c0_7, %c0_8] : memref<16x192xf32, #tpu.memory_space<vmem>>, vector<16x192xf32>
    %13 = arith.addf %12, %11 : vector<16x192xf32>
    %14 = vector.extract_strided_slice %13 {offsets = [0, 0], sizes = [16, 160], strides = [1, 1]} : vector<16x192xf32> to vector<16x160xf32>
    %15 = arith.truncf %6 : vector<16x32xf32> to vector<16x32xbf16>
    %c0_9 = arith.constant 0 : index
    %c0_10 = arith.constant 0 : index
    %16 = vector.load %arg4[%c0_9, %c0_10] : memref<32x160xbf16, #tpu.memory_space<vmem>>, vector<32x160xbf16>
    %cst_11 = arith.constant dense<0.000000e+00> : vector<16x160xf32>
    %17 = tpu.matmul %15, %16, %cst_11 {dimension_numbers = #tpu.dot_dimension_numbers<[1], [0], [0], [1], [0, 0, 1, 1], [], []>} : vector<16x32xbf16>, vector<32x160xbf16>, vector<16x160xf32> -> vector<16x160xf32>
    %18 = arith.addf %14, %17 : vector<16x160xf32>
    %19 = vector.extract_strided_slice %13 {offsets = [0, 160], sizes = [16, 32], strides = [1, 1]} : vector<16x192xf32> to vector<16x32xf32>
    %20 = vector.extract_strided_slice %18 {offsets = [0, 0], sizes = [16, 32], strides = [1, 1]} : vector<16x160xf32> to vector<16x32xf32>
    %21 = arith.negf %20 : vector<16x32xf32>
    %22 = math.exp %21 : vector<16x32xf32>
    %cst_12 = arith.constant 1.000000e+00 : f32
    %23 = vector.broadcast %cst_12 : f32 to vector<16x32xf32>
    %24 = arith.addf %23, %22 : vector<16x32xf32>
    %25 = arith.divf %23, %24 : vector<16x32xf32>
    %26 = vector.extract_strided_slice %18 {offsets = [0, 32], sizes = [16, 32], strides = [1, 1]} : vector<16x160xf32> to vector<16x32xf32>
    %27 = arith.negf %26 : vector<16x32xf32>
    %28 = math.exp %27 : vector<16x32xf32>
    %cst_13 = arith.constant 1.000000e+00 : f32
    %29 = vector.broadcast %cst_13 : f32 to vector<16x32xf32>
    %30 = arith.addf %29, %28 : vector<16x32xf32>
    %31 = arith.divf %29, %30 : vector<16x32xf32>
    %32 = vector.extract_strided_slice %18 {offsets = [0, 64], sizes = [16, 32], strides = [1, 1]} : vector<16x160xf32> to vector<16x32xf32>
    %33 = arith.negf %32 : vector<16x32xf32>
    %34 = math.exp %33 : vector<16x32xf32>
    %cst_14 = arith.constant 1.000000e+00 : f32
    %35 = vector.broadcast %cst_14 : f32 to vector<16x32xf32>
    %36 = arith.addf %35, %34 : vector<16x32xf32>
    %37 = arith.divf %35, %36 : vector<16x32xf32>
    %38 = vector.extract_strided_slice %18 {offsets = [0, 96], sizes = [16, 32], strides = [1, 1]} : vector<16x160xf32> to vector<16x32xf32>
    %39 = math.tanh %38 : vector<16x32xf32>
    %40 = vector.extract_strided_slice %18 {offsets = [0, 128], sizes = [16, 32], strides = [1, 1]} : vector<16x160xf32> to vector<16x32xf32>
    %41 = arith.negf %40 : vector<16x32xf32>
    %42 = math.exp %41 : vector<16x32xf32>
    %cst_15 = arith.constant 1.000000e+00 : f32
    %43 = vector.broadcast %cst_15 : f32 to vector<16x32xf32>
    %44 = arith.addf %43, %42 : vector<16x32xf32>
    %45 = arith.divf %43, %44 : vector<16x32xf32>
    %46 = arith.mulf %25, %39 : vector<16x32xf32>
    %47 = arith.mulf %37, %7 : vector<16x32xf32>
    %48 = arith.addf %46, %47 : vector<16x32xf32>
    %49 = math.tanh %48 : vector<16x32xf32>
    %50 = arith.mulf %31, %49 : vector<16x32xf32>
    %51 = arith.subf %50, %19 : vector<16x32xf32>
    %52 = arith.mulf %45, %51 : vector<16x32xf32>
    %53 = arith.addf %19, %52 : vector<16x32xf32>
    %54 = arith.truncf %53 : vector<16x32xf32> to vector<16x32xbf16>
    %c0_16 = arith.constant 0 : index
    %c0_17 = arith.constant 0 : index
    %55 = vector.load %arg5[%c0_16, %c0_17] : memref<32x128xbf16, #tpu.memory_space<vmem>>, vector<32x128xbf16>
    %cst_18 = arith.constant dense<0.000000e+00> : vector<16x128xf32>
    %56 = tpu.matmul %54, %55, %cst_18 {dimension_numbers = #tpu.dot_dimension_numbers<[1], [0], [0], [1], [0, 0, 1, 1], [], []>} : vector<16x32xbf16>, vector<32x128xbf16>, vector<16x128xf32> -> vector<16x128xf32>
    %c0_19 = arith.constant 0 : index
    %c0_20 = arith.constant 0 : index
    %57 = vector.load %arg6[%c0_19, %c0_20] : memref<1x128xf32, #tpu.memory_space<vmem>>, vector<1x128xf32>
    %58 = vector.broadcast %57 : vector<1x128xf32> to vector<16x128xf32>
    %59 = arith.addf %56, %58 : vector<16x128xf32>
    %c0_21 = arith.constant 0 : index
    %c0_22 = arith.constant 0 : index
    %60 = vector.load %arg7[%c0_21, %c0_22] : memref<16x128xf32, #tpu.memory_space<vmem>>, vector<16x128xf32>
    tpu.vector_store %arg7[%c0_21, %c0_22], %59 {strides = array<i32>} : memref<16x128xf32, #tpu.memory_space<vmem>>, vector<16x128xf32>,
    %61 = tpu.iota {dimensions = array<i32: 1>} : vector<16x128xi32>
    %c1_i32_23 = arith.constant 1 : i32
    %62 = vector.broadcast %c1_i32_23 : i32 to vector<16x128xi32>
    %63 = arith.cmpi sge, %61, %62 : vector<16x128xi32>
    %c6_i32 = arith.constant 6 : i32
    %64 = vector.broadcast %c6_i32 : i32 to vector<16x128xi32>
    %65 = arith.cmpi slt, %61, %64 : vector<16x128xi32>
    %66 = arith.andi %63, %65 : vector<16x128xi1>
    %cst_24 = arith.constant -1.000000e+30 : f32
    %67 = vector.broadcast %cst_24 : f32 to vector<16x128xf32>
    %68 = arith.select %66, %59, %67 : vector<16x128xi1>, vector<16x128xf32>
    %cst_25 = arith.constant dense<0xFF800000> : vector<16xf32>
    %69 = vector.multi_reduction <maximumf>, %68, %cst_25 [1] : vector<16x128xf32> to vector<16xf32>
    %70 = vector.shape_cast %69 : vector<16xf32> to vector<16x1xf32>
    %71 = vector.broadcast %70 : vector<16x1xf32> to vector<16x128xf32>
    %72 = arith.cmpf oeq, %68, %71 : vector<16x128xf32>
    %c128_i32 = arith.constant 128 : i32
    %73 = vector.broadcast %c128_i32 : i32 to vector<16x128xi32>
    %74 = arith.select %72, %61, %73 : vector<16x128xi1>, vector<16x128xi32>
    %cst_26 = arith.constant dense<2147483647> : vector<16xi32>
    %75 = vector.multi_reduction <minsi>, %74, %cst_26 [1] : vector<16x128xi32> to vector<16xi32>
    %76 = vector.shape_cast %75 : vector<16xi32> to vector<16x1xi32>
    %77 = tpu.iota {dimensions = array<i32: 1>} : vector<16x7xi32>
    %c1_i32_27 = arith.constant 1 : i32
    %78 = vector.broadcast %c1_i32_27 : i32 to vector<16x1xi32>
    %79 = arith.addi %76, %78 : vector<16x1xi32>
    %80 = vector.broadcast %79 : vector<16x1xi32> to vector<16x7xi32>
    %81 = arith.cmpi eq, %77, %80 : vector<16x7xi32>
    %cst_28 = arith.constant 1.000000e+00 : f32
    %cst_29 = arith.constant 0.000000e+00 : f32
    %82 = vector.broadcast %cst_28 : f32 to vector<16x7xf32>
    %83 = vector.broadcast %cst_29 : f32 to vector<16x7xf32>
    %84 = arith.select %81, %82, %83 : vector<16x7xi1>, vector<16x7xf32>
    %85 = tpu.concatenate %53, %48, %84 in 1 : vector<16x32xf32>, vector<16x32xf32>, vector<16x7xf32> -> vector<16x71xf32>
    %c1_i32_30 = arith.constant 1 : i32
    %86 = arith.addi %0, %c1_i32_30 : i32
    %87 = arith.index_cast %86 : i32 to index
    %c0_31 = arith.constant 0 : index
    %88 = vector.load %arg8[%87, %c0_31] : memref<49x71xf32, #tpu.memory_space<vmem>>, vector<16x71xf32>
    tpu.vector_store %arg8[%87, %c0_31], %85 {strides = array<i32>} : memref<49x71xf32, #tpu.memory_space<vmem>>, vector<16x71xf32>,
    return
  }
  func.func @transform_0(%arg0: i32, %arg1: memref<48xi32, #tpu.memory_space<smem>>) -> (i32, i32) {
    %c0_i32 = arith.constant 0 : i32
    %c0_i32_0 = arith.constant 0 : i32
    return %arg0, %c0_i32 : i32, i32
  }
  func.func @transform_1(%arg0: i32, %arg1: memref<48xi32, #tpu.memory_space<smem>>) -> (i32, i32) {
    %c0_i32 = arith.constant 0 : i32
    %c0_i32_0 = arith.constant 0 : i32
    %c0_i32_1 = arith.constant 0 : i32
    return %c0_i32, %c0_i32_0 : i32, i32
  }
  func.func @transform_2(%arg0: i32, %arg1: memref<48xi32, #tpu.memory_space<smem>>) -> (i32, i32) {
    %c0_i32 = arith.constant 0 : i32
    %c0_i32_0 = arith.constant 0 : i32
    %c0_i32_1 = arith.constant 0 : i32
    return %c0_i32, %c0_i32_0 : i32, i32
  }
  func.func @transform_3(%arg0: i32, %arg1: memref<48xi32, #tpu.memory_space<smem>>) -> (i32, i32) {
    %c0_i32 = arith.constant 0 : i32
    %c0_i32_0 = arith.constant 0 : i32
    %c0_i32_1 = arith.constant 0 : i32
    return %c0_i32, %c0_i32_0 : i32, i32
  }
  func.func @transform_4(%arg0: i32, %arg1: memref<48xi32, #tpu.memory_space<smem>>) -> (i32, i32) {
    %c0_i32 = arith.constant 0 : i32
    %c0_i32_0 = arith.constant 0 : i32
    %c0_i32_1 = arith.constant 0 : i32
    return %c0_i32, %c0_i32_0 : i32, i32
  }
  func.func @transform_5(%arg0: i32, %arg1: memref<48xi32, #tpu.memory_space<smem>>) -> (i32, i32) {
    %c0_i32 = arith.constant 0 : i32
    %c0_i32_0 = arith.constant 0 : i32
    return %arg0, %c0_i32 : i32, i32
  }
}

</mosaic_0001>

<bundles_post_ra>
// kernel: tpu_custom_call.1
= control target key start
LH: loop header
LB: loop body
LE: loop exit
PB: predicated region body
PF: predicated region fallthrough
CT: control target
= control target key end

     0   :  { %s1643_s0 = inlined_call_operand.hbm [shape: s32[48], index: 0, kind: input, shape index: {}]   ;;  %s1644_s1 = inlined_call_operand.hbm [shape: f32[48,192], index: 1, kind: input, shape index: {}]   ;;  %s1645_s2 = inlined_call_operand.hbm [shape: bf16[7,192], index: 2, kind: input, shape index: {}]   ;;  %s1646_s3 = inlined_call_operand.hbm [shape: bf16[32,160], index: 3, kind: input, shape index: {}]   ;;  %s1647_s4 = inlined_call_operand.hbm [shape: bf16[32,128], index: 4, kind: input, shape index: {}]   ;;  %s1648_s5 = inlined_call_operand.vmem [shape: f32[1,128], index: 5, kind: input, shape index: {}]   ;;  %s1649_s6 = inlined_call_operand.hbm [shape: f32[48,128], index: 6, kind: output, shape index: {}]  }
   0x1   :  { %s1039_s23 = scalar_lea.hbm %s1643_s0, 16 }
   0x2   :  { %p1040_p0 = scmp.ne.s32.totalorder %s1643_s0, %s1039_s23  ;;  %p1043_p1 = scmp.lt.u32.totalorder %s1039_s23, %s1643_s0 }
   0x4   :  { %p1045_p2 = pnand %p1043_p1, %p1040_p0 }
   0x6   :  { %1048 = shalt.err (!%p1045_p2)  }
   0x7   :  { %s1249_s28 = smov [#allocation5]  }
   0x8   :  { %12 = dma.hbm_to_smem %s1643_s0, 16, %s1249_s28, [#allocation4] }
   0x9   :  { %1211 = dma.done.wait [#allocation4], 16 }
   0xa   :  { %1212 = vsyncadd [#allocation4], 4294967280 }
   0xb   :  { %14 = sfence }
   0xc   :  { %15 = vsyncpa [#allocation7], 0 }
   0xd   :  { %17 = vsyncpa [#allocation7 + $0x1], 0 }
   0xe   :  { %18 = vsyncpa [#allocation10], 0 }
   0xf   :  { %19 = vsyncpa [#allocation13], 0 }
  0x10   :  { %20 = vsyncpa [#allocation8], 0 }
  0x11   :  { %22 = vsyncpa [#allocation8 + $0x1], 0  ;;  %s1318_s7 = smov 0   ;;  %s1320_s8 = smov 0  }
  0x12   :  { %s1322_s9 = smov 0   ;;  %s1324_s10 = smov 0  }
  0x13 LB: > { %s1339_s0 = sadd.s32 4294967295, %s1243_s10   ;;  %s842_s11 = sadd.s32 4294967294, %s1243_s10   ;;  %s1243_s10 = sphi %s1324_s10, %s1672_s10   ;;  %s1239_s9 = sphi %s1322_s9, %s1671_s9   ;;  %s1235_s8 = sphi %s1320_s8, %s1670_s8   ;;  %s1231_s7 = sphi %s1318_s7, %s1669_s7  }
  0x14   : > { %p48_p3 = scmp.ne.s32.totalorder %s1235_s8, %s1231_s7  ;;  %p1650_p4 = scmp.eq.s32.totalorder %s1339_s0, 0 }
  0x15   : > { %p162_p6 = scmp.eq.s32.totalorder %s842_s11, 2  ;;  %p843_p8 = scmp.ge.s32.totalorder %s1243_s10, 1 }
  0x16   : > { %p1348_p7 = por %p1650_p4, %p48_p3  ;;  %p169_p10 = scmp.lt.s32.totalorder %s1243_s10, 4 }
  0x17   : > { %p1353_p9 = por %p162_p6, %p48_p3  ;;  %s1250_s15 = smov [#allocation9]  }
  0x18   : > { %s1653_s12 = scalar_select %p1348_p7, 1, 0 }
  0x19   : > { %s1654_s13 = scalar_select %p1353_p9, 1, 0 }
  0x1a   : > { %p1359_p12 = pnand %p843_p8, %p169_p10  ;;  %s182_s16 = sshll.u32 %s1250_s15, 4  ;;  %s183_s16 = int_to_ptr.vmem [resolvable:$true] %s182_s16 }
  0x1b   : > { %s1251_s17 = smov [#allocation11]   ;;  %s1252_s20 = smov [#allocation12]  }
  0x1c   : > { %s1655_s14 = scalar_select %p1359_p12, 1, 0 }
  0x1d   : > { %p914_p13 = pneg %p1359_p12  ;;  %s192_s18 = sshll.u32 %s1251_s17, 4  ;;  %s1371_s18 = int_to_ptr.vmem [resolvable:$true] %s192_s18 }
  0x1e   : > { %s1373_s21 = sshll.u32 %s1252_s20, 4  ;;  %s1049_s24 = scalar_lea.hbm %s1645_s2, 128  ;;  %s206_s21 = int_to_ptr.vmem [resolvable:$true] %s1373_s21 }
  0x1f   : > { %p1367_p0 = pnand %p914_p13, %p1650_p4  ;;  %p1050_p1 = scmp.ne.s32.totalorder %s1645_s2, %s1049_s24 }
  0x20   : > { %p1056_p8 = scmp.lt.u32.totalorder %s1049_s24, %s1645_s2 }
  0x21   : > { %p1383_p2 = pneg %p1367_p0 }
  0x23   : > { %p1052_p3 = pnand %p1383_p2, %p1050_p1 }
  0x25   : > { %p1053_p6 = pneg %p1052_p3 }
  0x27   : > { %p1058_p10 = pnand %p1056_p8, %p1053_p6 }
  0x29   : > { %1061 = shalt.err (!%p1058_p10)
}
  0x2a   : > { %s1062_s30 = scalar_lea.vmem %s183_s16, 128  ;;  %p1070_p5 = scmp.lt.s32.totalorder %s183_s16, %s183_s16 }
  0x2b   : > { %p1063_p13 = scmp.ne.s32.totalorder %s183_s16, %s1062_s30  ;;  %p1071_p9 = scmp.lt.s32.totalorder %s1062_s30, %s1062_s30 }
  0x2d   : > { %p1065_p11 = pnand %p1063_p13, %p1383_p2  ;;  %p1072_p7 = por %p1071_p9, %p1070_p5 }
  0x2f   : > { %p1066_p4 = pneg %p1065_p11 }
  0x31   : > { %p1073_p12 = pnand %p1072_p7, %p1066_p4 }
  0x33   : > { %1076 = shalt.err (!%p1073_p12)
}
  0x34   : > { %917 = dma.hbm_to_vmem [thread:$0]  (!%p1367_p0), %s1645_s2, 128, %s183_s16, [#allocation10]  }
  0x35   : > { %s1077_s22 = scalar_lea.hbm %s1646_s3, 512 }
  0x36   : > { %p1078_p11 = scmp.ne.s32.totalorder %s1646_s3, %s1077_s22  ;;  %p1084_p4 = scmp.lt.u32.totalorder %s1077_s22, %s1646_s3 }
  0x38   : > { %p1080_p1 = pnand %p1078_p11, %p1383_p2 }
  0x3a   : > { %p1081_p5 = pneg %p1080_p1 }
  0x3c   : > { %p1086_p7 = pnand %p1084_p4, %p1081_p5 }
  0x3e   : > { %1089 = shalt.err (!%p1086_p7)
}
  0x3f   : > { %s1090_s16 = scalar_lea.vmem %s1371_s18, 512  ;;  %p1098_p6 = scmp.lt.s32.totalorder %s1371_s18, %s1371_s18 }
  0x40   : > { %p1091_p9 = scmp.ne.s32.totalorder %s1371_s18, %s1090_s16  ;;  %p1099_p8 = scmp.lt.s32.totalorder %s1090_s16, %s1090_s16 }
  0x42   : > { %p1093_p12 = pnand %p1091_p9, %p1383_p2  ;;  %p1100_p10 = por %p1099_p8, %p1098_p6 }
  0x44   : > { %p1094_p3 = pneg %p1093_p12 }
  0x46   : > { %p1101_p13 = pnand %p1100_p10, %p1094_p3 }
  0x48   : > { %1104 = shalt.err (!%p1101_p13)
}
  0x49   : > { %s1253_s28 = smov 128   ;;  %s1254_s29 = smov 8  }
  0x4a   : > { %920 = dma.hbm_to_vmem [thread:$0]  (!%p1367_p0), %s1646_s3, 512, %s1371_s18, [#allocation10], %s1253_s28, %s1253_s28, %s1254_s29  }
  0x4b   : > { %s1105_s20 = scalar_lea.hbm %s1647_s4, 256 }
  0x4c   : > { %p1106_p11 = scmp.ne.s32.totalorder %s1647_s4, %s1105_s20  ;;  %p1112_p4 = scmp.lt.u32.totalorder %s1105_s20, %s1647_s4 }
  0x4e   : > { %p1108_p1 = pnand %p1106_p11, %p1383_p2 }
  0x50   : > { %p1109_p5 = pneg %p1108_p1 }
  0x52   : > { %p1114_p7 = pnand %p1112_p4, %p1109_p5 }
  0x54   : > { %1117 = shalt.err (!%p1114_p7)
}
  0x55   : > { %s1118_s26 = scalar_lea.vmem %s206_s21, 256  ;;  %p1126_p6 = scmp.lt.s32.totalorder %s206_s21, %s206_s21 }
  0x56   : > { %p1119_p9 = scmp.ne.s32.totalorder %s206_s21, %s1118_s26  ;;  %p1127_p8 = scmp.lt.s32.totalorder %s1118_s26, %s1118_s26 }
  0x58   : > { %p1121_p12 = pnand %p1119_p9, %p1383_p2  ;;  %p1128_p10 = por %p1127_p8, %p1126_p6 }
  0x5a   : > { %p1122_p3 = pneg %p1121_p12 }
  0x5c   : > { %p1129_p13 = pnand %p1128_p10, %p1122_p3 }
  0x5e   : > { %1132 = shalt.err (!%p1129_p13)
}
  0x5f   : > { %s1255_s18 = smov 64   ;;  %s1256_s27 = smov 4  }
  0x60   : > { %923 = dma.hbm_to_vmem [thread:$0]  (!%p1367_p0), %s1647_s4, 256, %s206_s21, [#allocation13], %s1255_s18, %s1255_s18, %s1256_s27  }
  0x61   : > { %s1442_s29 = sadd.s32 1, %s1243_s10   ;;  %s35_s11 = sadd.s32 1, %s1239_s9 }
  0x62   : > { %s32_s30 = ssub.s32 %s1243_s10, %s1442_s29  ;;  %p42_p11 = scmp.ne.s32.totalorder %s1239_s9, %s1235_s8 }
  0x63   : > { %p33_p2 = scmp.eq.s32.totalorder %s32_s30, 0  ;;  %p43_p1 = scmp.eq.s32.totalorder %s1243_s10, 0 }
  0x64   : > { %p935_p5 = scmp.lt.s32.totalorder %s1243_s10, 3  ;;  %p1658_p7 = scmp.eq.s32.totalorder %s1339_s0, 2 }
  0x65   : > { %s1452_s15 = scalar_select %p33_p2, %s1239_s9, %s35_s11  }
  0x66   : > { %p44_p4 = por %p43_p1, %p42_p11  ;;  %p1456_p9 = por %p1658_p7, %p42_p11 }
  0x67   : > { %s222_s19 = sand.u32 1, %s1239_s9   ;;  %s885_s20 = sshll.u32 %s1243_s10, 9 }
  0x68   : > { %s848_s21 = sshll.u32 %s222_s19, 5  ;;  %s1465_s24 = scalar_lea.hbm %s1644_s1, %s885_s20 }
  0x69   : > { %s226_s25 = scalar_lea.vmem [#allocation6], %s848_s21  ;;  %p1467_p0 = pnand %p935_p5, %p44_p4 }
  0x6a   : > { %s234_s26 = sshll.u32 %s226_s25, 4  ;;  %s1473_s27 = scalar_lea.sflag [#allocation7], %s222_s19  ;;  %s1471_s26 = int_to_ptr.vmem [resolvable:$true] %s234_s26 }
  0x6b   : > { %s1133_s16 = scalar_lea.hbm %s1465_s24, 512  ;;  %p1135_p3 = pneg %p1467_p0 }
  0x6c   : > { %p1134_p12 = scmp.ne.s32.totalorder %s1465_s24, %s1133_s16  ;;  %s1138_s11 = scalar_lea.hbm %s1644_s1, 1536 }
  0x6d   : > { %p1139_p10 = scmp.lt.u32.totalorder %s1465_s24, %s1644_s1  ;;  %p1140_p13 = scmp.lt.u32.totalorder %s1138_s11, %s1133_s16 }
  0x6e   : > { %p1136_p6 = pnand %p1135_p3, %p1134_p12  ;;  %p1142_p11 = scmp.lt.u32.totalorder %s1133_s16, %s1465_s24 }
  0x6f   : > { %p1141_p2 = por %p1140_p13, %p1139_p10 }
  0x70   : > { %p1137_p8 = pneg %p1136_p6 }
  0x71   : > { %p1143_p1 = por %p1142_p11, %p1141_p2 }
  0x73   : > { %p1144_p5 = pnand %p1143_p1, %p1137_p8 }
  0x75   : > { %1147 = shalt.err (!%p1144_p5)
}
  0x76   : > { %s1148_s19 = scalar_lea.vmem %s1471_s26, 512  ;;  %s1257_s22 = smov [#allocation6]  }
  0x77   : > { %p1149_p4 = scmp.ne.s32.totalorder %s1471_s26, %s1148_s19  ;;  %s1153_s23 = sshll.u32 %s1257_s22, 4  ;;  %s1154_s23 = int_to_ptr.vmem [resolvable:$false] %s1153_s23 }
  0x78   : > { %s1155_s25 = scalar_lea.vmem %s1154_s23, 1024  ;;  %p1156_p6 = scmp.lt.s32.totalorder %s1471_s26, %s1154_s23 }
  0x79   : > { %p1151_p7 = pnand %p1149_p4, %p1135_p3  ;;  %p1157_p10 = scmp.lt.s32.totalorder %s1155_s25, %s1148_s19 }
  0x7b   : > { %p1152_p12 = pneg %p1151_p7  ;;  %p1158_p13 = por %p1157_p10, %p1156_p6 }
  0x7d   : > { %p1159_p2 = pnand %p1158_p13, %p1152_p12 }
  0x7f   : > { %1162 = shalt.err (!%p1159_p2)
}
  0x80   : > { %s1258_s16 = smov 256   ;;  %s1259_s28 = smov 16  }
  0x81   : > { %927 = dma.hbm_to_vmem [thread:$0]  (!%p1467_p0), %s1465_s24, 512, %s1471_s26, %s1473_s27, %s1258_s16, %s1258_s16, %s1259_s28  }
  0x82   : > { %p1661_p3 = scmp.ne.s32.totalorder %s1655_s14, 0 }
  0x83   : > { %s1504_s30 = sand.u32 (!%p1661_p3), 1, %s1235_s8   ;;  %p1662_p8 = scmp.ne.s32.totalorder (!%p1661_p3), %s1653_s12, 0 }
  0x84   : > { %246 = sbr.rel (%p1661_p3) target bundleno = 1928 (0x788), region = 40  ;;  %s853_s11 = sshll.u32 (!%p1661_p3), %s1504_s30, 5 }
  0x85   : > { %s249_s20 = scalar_lea.sflag (!%p1661_p3), [#allocation7], %s1504_s30  ;;  %s1508_s21 = scalar_lea.vmem (!%p1661_p3), [#allocation6], %s853_s11 }
  0x8b   : > { %1214 = dma.done.wait (%p1662_p8), %s249_s20, 512  }
  0x8c   : > { %1216 = vsyncadd (%p1662_p8), %s249_s20, 4294966784  ;;  %p1663_p0 = scmp.eq.s32.totalorder %s1339_s0, 0 }
  0x8e   : > { %1218 = dma.done.wait (%p1663_p0), [#allocation10], 640   ;;  %p1664_p11 = pmov %p1663_p0 }
  0x8f   : > { %p1665_p1 = pmov %p1663_p0 }
  0x90   : > { %1220 = vsyncadd (%p1664_p11), [#allocation10], 4294966656 }
  0x91   : > { %1222 = dma.done.wait (%p1665_p1), [#allocation13], 256   ;;  %p1666_p5 = pmov %p1663_p0 }
  0x92   : > { %s857_s14 = sshll.u32 %s1504_s30, 4  ;;  %s858_s24 = sshll.u32 %s1339_s0, 4 }
  0x93   : > { %1224 = vsyncadd (%p1666_p5), [#allocation13], 4294967040  ;;  %s1524_s26 = scalar_lea.vmem [#allocation14], %s857_s14  ;;  %p1667_p4 = scmp.ne.s32.totalorder %s1339_s0, 0 }
  0x94   : > { %v299_v0 = vlaneseq (!%p1667_p4)  ;;  %vm303_vm0 = vcmask (!%p1667_p4), 573440   ;;  %v1260_v2 = vmov (!%p1667_p4), 0.0  }
  0x95   : > { %298 = sbr.rel (%p1667_p4) target bundleno = 156 (0x9c), region = 60 }
  0x96   : > { %v300_v1 = vand.u32 (!%p1667_p4), 127, %v299_v0 }
  0x98   : > { %vm301_vm1 = vcmp.eq.s32.totalorder (!%p1667_p4), %v300_v1, 64 }
  0x99   : > { %v302_v3 = vsel (!%p1667_p4), %vm301_vm1, 1.0, %v1260_v2 }
  0x9a   : > { %304 = vst.msk [vmem:[#allocation2] sm:$0x1] (!%p1667_p4), %vm303_vm0, %v302_v3 }
  0x9c PF: > { %s1245_s12 = smov 0  }
  0x9d LB: >> { %s311_s18 = sadd.s32 %s1247_s12, %s858_s24  ;;  %vm316_vm2 = vcmask 573440   ;;  %s315_s22 = scalar_lea.vmem [#allocation3], %s1247_s12  ;;  %s1247_s12 = sphi %s1245_s12, %s310_s12  }
  0x9e   : >> { %s312_s27 = sld [smem:[#allocation5 + %s311_s18]]  ;;  %s310_s12 = sadd.s32 1, %s1247_s12  }
  0x9f   : >> { %p307_p7 = scmp.ge.s32.totalorder %s310_s12, 16  }
  0xa0   : > { %vm334_vm3 = vcmask (%p307_p7), 1042432   ;;  %vm335_vm4 = vcmask (%p307_p7), 1043456   ;;  %v1005_v8 = vld [vmem:[#allocation11 + $0x4] ss:$8 sps:$4 sm:$0xff] (%p307_p7)   ;;  %v1007_v9 = vld [vmem:[#allocation11] ss:$8 sps:$4 sm:$0xff] (%p307_p7)  }
  0xa1   : > { %309 = sbr.rel (!%p307_p7) target bundleno = 157 (0x9d), region = 111  ;;  %v1008_v10 = vld [vmem:[#allocation11 + $0x14] ss:$8 sps:$4 sm:$0xff] (%p307_p7)   ;;  %v1261_v11 = vmov (%p307_p7), 65535   ;;  %s1262_s23 = smov (%p307_p7), 64   ;;  %423 = vmatprep.subr.bf16.mxu1 (%p307_p7), %v1005_v8  ;;  %v1263_v18 = vmov (%p307_p7), 0  }
  0xa2   : > { %v336_v12 = vsel (%p307_p7), %vm334_vm3, 4294967295, %v1261_v11  ;;  %v321_v13 = vld [vmem:[#allocation9] sm:$0xff] (%p307_p7)  ;;  %424 = vmatpush1.bf16.msra.mxu1 (%p307_p7), %v1007_v9  ;;  %455 = vmatprep.mubr.bf16.mxu1 (%p307_p7), %v1263_v18  ;;  %s1264_s25 = smov (%p307_p7), 32   ;;  %vm419_vm5 = vcmask (%p307_p7), 261120   ;;  %vm330_vm6 = vcmask (%p307_p7), 56320   ;;  %v389_v28 = vld [vmem:[%s1508_s21 + $0x10] sm:$0xff] (%p307_p7) }
  0xa3   : > { %v337_v14 = vsel (%p307_p7), %vm335_vm4, %v336_v12, 0  ;;  %v1011_v15 = vld [vmem:[#allocation11 + $0x10] ss:$8 sps:$4 sm:$0xff] (%p307_p7)   ;;  %v861_v16 = vcombine.high (%p307_p7), %v321_v13, %v321_v13  ;;  %v860_v17 = vcombine.low (%p307_p7), %v321_v13, %v321_v13  ;;  %425 = vmatprep.subr.bf16.mxu1 (%p307_p7), %v1008_v10  ;;  %376 = vmatprep.mubr.bf16.mxu0 (%p307_p7), %v1263_v18  ;;  %v388_v60 = vld [vmem:[%s1508_s21 + $0x8] sm:$0xff] (%p307_p7)  ;;  %s1265_s16 = smov (%p307_p7), 96   ;;  %vm1267_vm7 = vmmov (%p307_p7), 0  }
  0xa4   : >> { %s313_s19 = scalar_lea.vmem [#allocation2], %s312_s27  ;;  %v387_v26 = vld [vmem:[%s1508_s21] sm:$0xff] (%p307_p7)  ;;  %v390_v61 = vld [vmem:[%s1508_s21 + $0x18] sm:$0xff] (%p307_p7)  ;;  %s886_s20 = sshll.u32 (%p307_p7), %s1339_s0, 8 }
  0xa5   : >> { %v314_v4 = vld [vmem:[%s313_s19] sm:$0x1]  ;;  %v342_v19 = vand.u32 (%p307_p7), %v861_v16, %v337_v14  ;;  %v339_v20 = vand.u32 (%p307_p7), %v860_v17, %v337_v14  ;;  %v1013_v14 = vld [vmem:[#allocation12] sm:$0xff] (%p307_p7)   ;;  %v1014_v16 = vld [vmem:[#allocation12 + $0x8] sm:$0xff] (%p307_p7)   ;;  %s1586_s12 = scalar_lea.hbm (%p307_p7), %s1649_s6, %s886_s20  ;;  %s730_s18 = sshll.u32 (%p307_p7), %s1524_s26, 4  ;;  %s1589_s18 = int_to_ptr.vmem [resolvable:$true] %s730_s18 }
  0xa6   : >> { %317 = vst.msk [vmem:[%s315_s22] sm:$0x1] %vm316_vm2, %v314_v4  ;;  %426 = vmatpush1.bf16.msra.mxu1 (%p307_p7), %v1011_v15  ;;  %v1266_v15 = vmov (%p307_p7), 0.0   ;;  %s717_s27 = scalar_lea.sflag (%p307_p7), [#allocation8], %s1504_s30  ;;  %s1163_s19 = scalar_lea.vmem (%p307_p7), %s1589_s18, 256 }
  0xa7   : > { %344 = vmatprep.subr.bf16.mxu0 (%p307_p7), %v342_v19  ;;  %p1164_p12 = scmp.ne.s32.totalorder (%p307_p7), %s1589_s18, %s1163_s19  ;;  %s1268_s22 = smov (%p307_p7), [#allocation14]  }
  0xa8   : > { %345 = vmatpush1.bf16.msra.mxu0 %v339_v20 }
  0xa9   : > { %890 = vmatprep.subr.bf16.mxu0 %v1266_v15  ;;  %p1165_p6 = pnand %p1164_p12, %p1456_p9 }
  0xab   : > { %p1166_p10 = pneg %p1165_p6 }
  0xad   : > { %v318_v5 = vld [vmem:[#allocation3] sm:$0xff]  ;;  %v319_v6 = vld [vmem:[#allocation3 + $0x8] sm:$0xff] }
  0xae   : > { %v320_v7 = vpack.c.bf16 %v319_v6, %v318_v5  ;;  %510 = vrot.lane.b32.xlu1 %v319_v6, %s1264_s25 }
  0xb0   : > { %323 = vrot.lane.b32.xlu0 %v320_v7, %s1262_s23  ;;  %867 = vmatmul.mubr.msk.bf16.vlgmr.msra.gmra.mrb[0].mxu1 %vm419_vm5, %v320_v7 }
  0xb4   : > { %508 = vrot.lane.b32.xlu0 %v318_v5, %s1264_s25 }
 0x120   : > { %v511_v46 = vpop.permute.xlu1 %510 }
 0x122   : > { %v324_v21 = vpop.permute.xlu0 %323 }
 0x123   : > { %862 = vmatmul.mubr.msk.bf16.vlgmr.msra.gmra.mrb[0].mxu0 %vm330_vm6, %v324_v21 }
 0x124   : > { %894 = vmatprep.mubr.msk.bf16.mxu0 %vm1267_vm7, %v1266_v15  ;;  %891 = vmatpush3.bf16.msra.mxu0 %v1013_v14 }
 0x125   : > { %892 = vmatprep.subr.bf16.mxu0 %v1266_v15 }
 0x126   : > { %v509_v44 = vpop.permute.xlu0 %508 }
 0x128   : > { %893 = vmatpush3.bf16.msra.mxu0 %v1014_v16 }
 0x183   : > { %v457_v22 = vpop.f32.mrb[0].mxu1 }
 0x184   : > { %v1534_v23 = vpop.f32.mrb[1].mxu1 }
 0x185   : > { %v461_v24 = vpop.f32.mrb[2].mxu1 }
 0x186   : > { %v1536_v25 = vpop.f32.mrb[3].mxu1 }
 0x1f6   : > { %v378_v27 = vpop.f32.mrb[0].mxu0 }
 0x1f7   : > { %v391_v29 = vadd.f32 %v387_v26, %v378_v27  ;;  %v380_v30 = vpop.f32.mrb[1].mxu0 }
 0x1f8   : > { %v382_v31 = vpop.f32.mrb[2].mxu0  ;;  %v392_v63 = vadd.f32 %v388_v60, %v380_v30 }
 0x1f9   : > { %v466_v32 = vadd.f32 %v457_v22, %v391_v29  ;;  %v393_v33 = vadd.f32 %v389_v28, %v382_v31  ;;  %v384_v34 = vpop.f32.mrb[3].mxu0  ;;  %v633_v29 = vlaneseq  ;;  %v872_v31 = vld [vmem:[%s1648_s5] ss:$0 sm:$0xff] }
 0x1fa   : > { %v394_v2 = vadd.f32 %v390_v61, %v384_v34  ;;  %v467_v6 = vadd.f32 %v1534_v23, %v392_v63 }
 0x1fb   : > { %v868_v35 = vmul.f32 -1.442695, %v466_v32  ;;  %1015 = vtanh.f32 %v466_v32  ;;  %v468_v36 = vadd.f32 %v461_v24, %v393_v33  ;;  %v1565_v30 = vand.u32 127, %v633_v29 }
 0x1fc   : > { %v469_v7 = vadd.f32 %v1536_v25, %v394_v2  ;;  %v870_v8 = vmul.f32 -1.442695, %v467_v6 }
 0x1fd   : > { %1017 = vpow2.f32 %v868_v35  ;;  %v869_v37 = vmul.f32 -1.442695, %v468_v36  ;;  %vm635_vm8 = vcmp.ge.s32.totalorder %v1565_v30, 1  ;;  %vm636_vm9 = vcmp.lt.s32.totalorder %v1565_v30, 6 }
 0x1fe   : > { %v871_v9 = vmul.f32 -1.442695, %v469_v7  ;;  %vm637_vm10 = vmand %vm635_vm8, %vm636_vm9 }
 0x1ff   : > { %1019 = vpow2.f32 %v869_v37 }
 0x200   : > { %1021 = vtanh.f32 %v468_v36 }
 0x205   : > { %v1016_v38 = vpop.eup %1015 }
 0x206   : > { %498 = vrot.lane.b32.xlu1 %v1016_v38, %s1264_s25 }
 0x207   : > { %v1018_v39 = vpop.eup %1017 }
 0x208   : > { %v476_v40 = vadd.f32 1.0, %v1018_v39 }
 0x209   : > { %v1020_v41 = vpop.eup %1019 }
 0x20a   : > { %v1022_v42 = vpop.eup %1021  ;;  %1023 = vrcp.f32 %v476_v40  ;;  %v477_v43 = vadd.f32 1.0, %v1020_v41 }
 0x20b   : > { %500 = vrot.lane.b32.xlu0 %v1022_v42, %s1264_s25 }
 0x20c   : > { %1025 = vrcp.f32 %v477_v43 }
 0x214   : > { %v1024_v45 = vpop.eup %1023 }
 0x215   : > { %v514_v47 = vmul.f32 %v1024_v45, %v509_v44 }
 0x216   : > { %v1026_v48 = vpop.eup %1025 }
 0x217   : > { %v515_v49 = vmul.f32 %v1026_v48, %v511_v46  ;;  %518 = vrot.lane.b32.xlu1 %v514_v47, %s1262_s23 }
 0x219   : > { %520 = vrot.lane.b32.xlu0 %v515_v49, %s1262_s23 }
 0x278   : > { %v499_v50 = vpop.permute.xlu1 %498 }
 0x279   : > { %v504_v52 = vmul.f32 %v1024_v45, %v499_v50 }
 0x27d   : > { %v501_v51 = vpop.permute.xlu0 %500 }
 0x27e   : > { %v505_v54 = vmul.f32 %v1026_v48, %v501_v51 }
 0x289   : > { %v519_v53 = vpop.permute.xlu1 %518 }
 0x28a   : > { %v1544_v55 = vadd.f32 %v519_v53, %v504_v52 }
 0x28b   : > { %v521_v56 = vpop.permute.xlu0 %520 }
 0x28c   : > { %1027 = vtanh.f32 %v1544_v55  ;;  %v1547_v57 = vadd.f32 %v521_v56, %v505_v54 }
 0x28e   : > { %1029 = vtanh.f32 %v1547_v57 }
 0x28f   : > { %1031 = vpow2.f32 %v870_v8 }
 0x290   : > { %1033 = vpow2.f32 %v871_v9 }
 0x296   : > { %v1028_v58 = vpop.eup %1027 }
 0x297   : > { %530 = vrot.lane.b32.xlu1 %v1028_v58, %s1264_s25 }
 0x298   : > { %v1030_v59 = vpop.eup %1029 }
 0x299   : > { %532 = vrot.lane.b32.xlu0 %v1030_v59, %s1264_s25  ;;  %v1032_v10 = vpop.eup %1031 }
 0x29a   : > { %v1034_v11 = vpop.eup %1033  ;;  %v490_v12 = vadd.f32 1.0, %v1032_v10 }
 0x29b   : > { %v491_v13 = vadd.f32 1.0, %v1034_v11 }
 0x29c   : > { %1035 = vrcp.f32 %v490_v12 }
 0x29d   : > { %1037 = vrcp.f32 %v491_v13 }
 0x2a6   : > { %v1036_v17 = vpop.eup %1035 }
 0x2a7   : > { %v1038_v20 = vpop.eup %1037 }
 0x309   : > { %v531_v62 = vpop.permute.xlu1 %530 }
 0x30a   : > { %v536_v0 = vmul.f32 %v1024_v45, %v531_v62 }
 0x30b   : > { %v533_v1 = vpop.permute.xlu0 %532 }
 0x30c   : > { %v538_v3 = vsub.f32 %v536_v0, %v392_v63  ;;  %v537_v4 = vmul.f32 %v1026_v48, %v533_v1 }
 0x30e   : > { %v539_v5 = vsub.f32 %v537_v4, %v394_v2  ;;  %542 = vrot.lane.b32.xlu1 %v538_v3, %s1265_s16 }
 0x310   : > { %544 = vrot.lane.b32.xlu0 %v539_v5, %s1265_s16 }
 0x380   : > { %v543_v18 = vpop.permute.xlu1 %542 }
 0x381   : > { %v548_v19 = vmul.f32 %v1036_v17, %v543_v18 }
 0x382   : > { %v545_v21 = vpop.permute.xlu0 %544 }
 0x383   : > { %v549_v22 = vmul.f32 %v1038_v20, %v545_v21  ;;  %552 = vrot.lane.b32.xlu1 %v548_v19, %s1264_s25 }
 0x385   : > { %554 = vrot.lane.b32.xlu0 %v549_v22, %s1264_s25 }
 0x3f5   : > { %v553_v23 = vpop.permute.xlu1 %552 }
 0x3f6   : > { %v558_v25 = vadd.f32 %v553_v23, %v392_v63 }
 0x3f7   : > { %v555_v24 = vpop.permute.xlu0 %554 }
 0x3f8   : > { %v559_v26 = vadd.f32 %v555_v24, %v394_v2 }
 0x3fa   : > { %v560_v27 = vpack.c.bf16 %v559_v26, %v558_v25 }
 0x3fc   : > { %573 = vrot.lane.b32.xlu1 %v560_v27, %s1265_s16 }
 0x46e   : > { %v574_v28 = vpop.permute.xlu1 %573 }
 0x46f   : > { %895 = vmatmul.mubr.msk.bf16.vlgmr.msra.gmra.mrb[4].mxu0 %vm419_vm5, %v574_v28 }
 0x542   : > { %v624_v32 = vpop.f32.mrb[4].mxu0 }
 0x543   : > { %v625_v33 = vadd.f32 %v872_v31, %v624_v32  ;;  %v896_v34 = vpop.f32.mrb[5].mxu0 }
 0x544   : > { %v627_v35 = vpop.f32.mrb[6].mxu0 }
 0x545   : > { %631 = vst [vmem:[%s1524_s26] sm:$0xff] %v625_v33  ;;  %v628_v36 = vadd.f32 %v872_v31, %v627_v35  ;;  %v897_v37 = vpop.f32.mrb[7].mxu0  ;;  %v638_v38 = vsel %vm637_vm10, %v625_v33, -1e+30 }
 0x546   : > { %640 = vmax.xlane.f32.xlu0 %v638_v38 }
 0x547   : > { %632 = vst [vmem:[%s1524_s26 + $0x8] sm:$0xff] %v628_v36  ;;  %v639_v39 = vsel %vm637_vm10, %v628_v36, -1e+30 }
 0x548   : > { %642 = vmax.xlane.f32.xlu1 %v639_v39 }
 0x5d3   : > { %v641_v40 = vpop.xlane.xlu0 %640 }
 0x5d4   : > { %vm644_vm11 = vcmp.eq.f32.partialorder %v638_v38, %v641_v40 }
 0x5d5   : > { %v646_v41 = vsel %vm644_vm11, %v1565_v30, 128  ;;  %v643_v42 = vpop.xlane.xlu1 %642 }
 0x5d6   : > { %vm645_vm12 = vcmp.eq.f32.partialorder %v639_v39, %v643_v42  ;;  %v649_v43 = vshra.s32 %v646_v41, 16  ;;  %v648_v48 = vand.u32 65535, %v646_v41 }
 0x5d7   : > { %v647_v44 = vsel %vm645_vm12, %v1565_v30, 128 }
 0x5d8   : > { %v651_v45 = vcvt.s32.f32 %v649_v43  ;;  %v663_v46 = vshra.s32 %v647_v44, 16  ;;  %v662_v49 = vand.u32 65535, %v647_v44  ;;  %v650_v51 = vcvt.s32.f32 %v648_v48 }
 0x5da   : > { %652 = vmin.xlane.f32.xlu0 %v651_v45  ;;  %v665_v47 = vcvt.s32.f32 %v663_v46  ;;  %v664_v54 = vcvt.s32.f32 %v662_v49 }
 0x5de   : > { %666 = vmin.xlane.f32.xlu0 %v665_v47 }
 0x667   : > { %v653_v50 = vpop.xlane.xlu0 %652 }
 0x668   : > { %vm654_vm13 = vcmp.eq.f32.partialorder %v651_v45, %v653_v50  ;;  %v659_v58 = vcvt.f32.s32 %v653_v50 }
 0x669   : > { %v655_v52 = vsel %vm654_vm13, %v650_v51, inf }
 0x66a   : > { %656 = vmin.xlane.f32.xlu1 %v655_v52  ;;  %v660_v60 = vshll.u32 %v659_v58, 16 }
 0x66b   : > { %v667_v53 = vpop.xlane.xlu0 %666 }
 0x66c   : > { %vm668_vm14 = vcmp.eq.f32.partialorder %v665_v47, %v667_v53  ;;  %v673_v61 = vcvt.f32.s32 %v667_v53 }
 0x66d   : > { %v669_v56 = vsel %vm668_vm14, %v664_v54, inf }
 0x66e   : > { %670 = vmin.xlane.f32.xlu0 %v669_v56  ;;  %v674_v1 = vshll.u32 %v673_v61, 16 }
 0x67b   : > { %684 = vrot.lane.b32.xlu1 %v558_v25, %s1265_s16 }
 0x67f   : > { %692 = vrot.lane.b32.xlu1 %v1544_v55, %s1264_s25 }
 0x683   : > { %694 = vrot.lane.b32.xlu1 %v1547_v57, %s1264_s25  ;;  %s1167_s25 = sshll.u32 %s1268_s22, 4  ;;  %s1168_s25 = int_to_ptr.vmem [resolvable:$false] %s1167_s25 }
 0x684   : > { %686 = vrot.lane.b32.xlu0 %v559_v26, %s1265_s16  ;;  %s1169_s16 = scalar_lea.vmem %s1168_s25, 512  ;;  %p1170_p13 = scmp.lt.s32.totalorder %s1589_s18, %s1168_s25 }
 0x685   : > { %p1171_p2 = scmp.lt.s32.totalorder %s1169_s16, %s1163_s19 }
 0x687   : > { %p1172_p3 = por %p1171_p2, %p1170_p13 }
 0x689   : > { %p1173_p8 = pnand %p1172_p3, %p1166_p10 }
 0x6f7   : > { %v657_v59 = vpop.xlane.xlu1 %656 }
 0x6f8   : > { %v658_v62 = vcvt.f32.s32 %v657_v59 }
 0x6fa   : > { %v661_v63 = vadd.s32 %v660_v60, %v658_v62 }
 0x6fb   : > { %v671_v0 = vpop.xlane.xlu0 %670 }
 0x6fc   : > { %v676_v2 = vadd.s32 1, %v661_v63  ;;  %v672_v3 = vcvt.f32.s32 %v671_v0 }
 0x6fe   : > { %v675_v55 = vadd.s32 %v674_v1, %v672_v3  ;;  %vm678_vm15 = vcmp.eq.s32.totalorder %v1565_v30, %v676_v2 }
 0x700   : > { %v677_v57 = vadd.s32 1, %v675_v55 }
 0x701   : > { %1176 = shalt.err (!%p1173_p8)
}
 0x702   : > { %s1177_s26 = scalar_lea.hbm %s1586_s12, 256  ;;  %s1181_s20 = scalar_lea.hbm %s1649_s6, 768 }
 0x703   : > { %p1178_p0 = scmp.ne.s32.totalorder %s1586_s12, %s1177_s26  ;;  %p1182_p5 = scmp.lt.u32.totalorder %s1586_s12, %s1649_s6 }
 0x704   : > { %p1183_p4 = scmp.lt.u32.totalorder %s1181_s20, %s1177_s26  ;;  %p1185_p12 = scmp.lt.u32.totalorder %s1177_s26, %s1586_s12 }
 0x705   : > { %p1179_p11 = pnand %p1178_p0, %p1456_p9 }
 0x706   : > { %p1184_p7 = por %p1183_p4, %p1182_p5 }
 0x707   : > { %p1180_p1 = pneg %p1179_p11 }
 0x708   : > { %p1186_p6 = por %p1185_p12, %p1184_p7 }
 0x70a   : > { %p1187_p10 = pnand %p1186_p6, %p1180_p1 }
 0x70c   : > { %1190 = shalt.err (!%p1187_p10)
}
 0x70d   : > { %s1269_s19 = smov 128   ;;  %s1270_s22 = smov 8   ;;  %vm679_vm0 = vcmp.eq.s32.totalorder %v1565_v30, %v677_v57  ;;  %v680_v4 = vsel %vm678_vm15, 1.0, %v1266_v15  ;;  %v685_v7 = vpop.permute.xlu1 %684  ;;  %v687_v9 = vpop.permute.xlu0 %686  ;;  %vm708_vm1 = vcmask 523264   ;;  %vm713_vm2 = vcmask 580608  }
 0x70e   : > { %912 = dma.vmem_to_hbm [thread:$0]  (%p1456_p9), %s1589_s18, 256, %s1586_s12, %s717_s27, %s1269_s19, %s1269_s19, %s1270_s22   ;;  %v681_v5 = vsel %vm679_vm0, 1.0, %v1266_v15 }
 0x70f   : > { %v1000_v6 = vpack.i.bf16 %v681_v5, %v680_v4  ;;  %s776_s17 = scalar_lea.vmem [#allocation2], %s858_s24 }
 0x711   : > { %1001 = vrot.lane.b32.xlu0 %v1000_v6, %s1262_s23  ;;  %v693_v8 = vpop.permute.xlu1 %692 }
 0x712   : > { %v706_v14 = vsel %vm419_vm5, %v685_v7, %v693_v8 }
 0x715   : > { %v695_v10 = vpop.permute.xlu1 %694 }
 0x716   : > { %v707_v16 = vsel %vm419_vm5, %v687_v9, %v695_v10 }
 0x783   : > { %v1002_v11 = vpop.permute.xlu0 %1001 }
 0x784   : > { %v1004_v12 = vunpack.i.h.bf16 %v1002_v11  ;;  %v1003_v13 = vunpack.i.l.bf16 %v1002_v11 }
 0x786   : > { %v709_v17 = vsel %vm708_vm1, %v706_v14, %v1003_v13  ;;  %v710_v18 = vsel %vm708_vm1, %v707_v16, %v1004_v12 }
 0x787   : > { %877 = vst.msk [vmem:[%s776_s17 + $0x1] sm:$0xff] %vm713_vm2, %v709_v17  ;;  %878 = vst.msk [vmem:[%s776_s17 + $0x9] sm:$0xff] %vm713_vm2, %v710_v18 }
 0x788 PF: > { %p939_p9 = scmp.ge.s32.totalorder %s1243_s10, 2  ;;  %s745_s30 = sand.u32 1, %s1231_s7  }
 0x789   : > { %p1668_p13 = scmp.ne.s32.totalorder %s1654_s13, 0  ;;  %s746_s23 = scalar_lea.sflag [#allocation8], %s745_s30 }
 0x78b   : > { %p929_p2 = pnand %p939_p9, %p1668_p13 }
 0x78d   : > { %1226 = dma.done.wait (!%p929_p2), %s746_s23, 256  }
 0x78e   : > { %1228 = vsyncadd (!%p929_p2), %s746_s23, 4294967040  ;;  %p25_p3 = scmp.ge.s32.totalorder %s1442_s29, 5   ;;  %s1669_s7 = smov %s1235_s8 }
 0x78f   : > { %s1670_s8 = smov %s1239_s9  ;;  %s1671_s9 = smov %s1452_s15 }
 0x790   : > { %s1672_s10 = smov %s1442_s29  ;;  %27 = sbr.rel (!%p25_p3) target bundleno = 19 (0x13), region = 122 }
 0x797   :  { %751 = vsyncpa [#allocation7], 1 }
 0x798   :  { %753 = vsyncpa [#allocation7 + $0x1], 1 }
 0x799   :  { %754 = vsyncpa [#allocation10], 1 }
 0x79a   :  { %755 = vsyncpa [#allocation13], 1 }
 0x79b   :  { %756 = vsyncpa [#allocation8], 1 }
 0x79c   :  { %758 = vsyncpa [#allocation8 + $0x1], 1 }

</bundles_post_ra>
